<compile_context>
chip_gen: v6e
topology: v6e:2x2x1
jax: 0.10.0
libtpu: 0.0.40
codegen_flags: <defaults>
</compile_context>

<pallas_src>
import jax
import jax.numpy as jnp
from jax.experimental import pallas as pl
from jax.experimental.pallas import tpu as pltpu


# --------------------------------------------------------------------------- #
# Kernel
# --------------------------------------------------------------------------- #
def teacher_front_kernel(x_ref, w12_ref, wcat_ref, beff_ref, o_ref):
    # x arrives f32 (no wrapper-side cast pass); cast to bf16 on the VPU here.
    x = x_ref[...].astype(jnp.bfloat16)                       # (TILE_B, D_in)

    # Fused old|new branch: one MXU matmul, K = D_in, N = D_old + D_new.
    x12 = jnp.dot(x, w12_ref[...], preferred_element_type=jnp.float32)

    # Fused inter (concat + Linear): one matmul, K = D_old + D_new; biases
    # (bo, bn, bi) are pre-folded into beff, so a single f32 bias add remains.
    y = (jnp.dot(x12.astype(jnp.bfloat16), wcat_ref[...],
                 preferred_element_type=jnp.float32)
         + beff_ref[...])

    o_ref[...] = y.astype(o_ref.dtype)                         # bf16 writeback


# --------------------------------------------------------------------------- #
# One-time parameter preparation (do NOT re-run per forward call)
# --------------------------------------------------------------------------- #
def prepare_params(params):
    """Fuse/cast weights and fold biases once; reuse the result across calls."""
    wo, bo, wn, bn, wi1, wi2, bi = params
    w12 = jnp.concatenate([wo, wn], axis=1)                    # (d_in, d_old+d_new)
    wcat = jnp.concatenate([wi1, wi2], axis=0)                 # (d_old+d_new, d_out)
    b12 = jnp.concatenate([bo, bn], axis=1)                    # (1, d_old+d_new)

    w12_bf = w12.astype(jnp.bfloat16)
    wcat_bf = wcat.astype(jnp.bfloat16)

    # Exact affine fold of the branch biases through the (data-path) weights.
    b_eff = (b12.astype(jnp.float32) @ wcat_bf.astype(jnp.float32)
             + bi.astype(jnp.float32))                         # (1, d_out) f32
    return w12_bf, wcat_bf, b_eff


# --------------------------------------------------------------------------- #
# Wrapper
# --------------------------------------------------------------------------- #
def _round_up(n, m):
    return ((n + m - 1) // m) * m


def _choose_tile(batch, *, tile_b_max=256, min_steps=8):
    # Enough grid steps for per-core software pipelining (v7x shards the
    # parallel batch axis across 2 TCs -> aim for >= 4 steps/core), tile a
    # multiple of 8 sublanes, minimal batch-padding waste.
    tile = max(8, min(tile_b_max, _round_up(pl.cdiv(batch, min_steps), 8)))
    nb = pl.cdiv(batch, tile)
    return tile, nb


def teacher_front_forward(x, prepared, *, tile_b_max=256, min_steps=8):
    """Full TeacherFrontModel forward in one pipelined Pallas call.

    `prepared` is the output of prepare_params(params) (cached across calls).
    Returns bf16 of shape (B, d_out).
    """
    w12_bf, wcat_bf, b_eff = prepared
    B, d_in = x.shape
    d_hidden = w12_bf.shape[1]
    d_out = wcat_bf.shape[1]

    tile_b, nb = _choose_tile(B, tile_b_max=tile_b_max, min_steps=min_steps)
    pad_b = nb * tile_b
    x_in = jnp.pad(x, ((0, pad_b - B), (0, 0))) if pad_b != B else x

    def call(weight_bufs):
        bf16_b, f32_b = 2, 4
        footprint = (
            2 * tile_b * d_in * f32_b                 # x tile, double-buffered (f32 in)
            + 2 * tile_b * d_out * bf16_b             # out tile, double-buffered (bf16)
            + weight_bufs * (w12_bf.size + wcat_bf.size) * bf16_b
            + weight_bufs * b_eff.size * f32_b
            # in-kernel intermediates: x bf16 copy, x12 f32 + bf16 copy, y f32
            + tile_b * d_in * bf16_b
            + tile_b * d_hidden * (f32_b + bf16_b)
            + tile_b * d_out * f32_b)
        try:
            vmem_cap = pltpu.get_tpu_info().vmem_capacity_bytes
        except Exception:
            vmem_cap = 64 << 20        # conservative (v7x); v5e/v6e have 128 MiB
        vmem_limit = int(min(max(footprint + (8 << 20), 32 << 20),
                             (vmem_cap * 3) // 4))

        if weight_bufs == 1:
            # Constant index_map -> block never changes; single-buffer it.
            def resident(shape):
                return pl.BlockSpec(shape, lambda i: tuple(0 for _ in shape),
                                    pipeline_mode=pl.Buffered(1))
        else:
            def resident(shape):
                return pl.BlockSpec(shape, lambda i: tuple(0 for _ in shape))

        return pl.pallas_call(
            teacher_front_kernel,
            out_shape=jax.ShapeDtypeStruct((pad_b, d_out), jnp.bfloat16),
            grid=(nb,),
            in_specs=[
                pl.BlockSpec((tile_b, d_in), lambda i: (i, 0)),   # x: tiled batch
                resident(w12_bf.shape),                            # VMEM-resident
                resident(wcat_bf.shape),
                resident(b_eff.shape),
            ],
            out_specs=pl.BlockSpec((tile_b, d_out), lambda i: (i, 0)),
            compiler_params=pltpu.CompilerParams(
                dimension_semantics=("parallel",),                 # megacore on v7x
                vmem_limit_bytes=vmem_limit,
            ),
        )(x_in, w12_bf, wcat_bf, b_eff)

    try:
        y = call(weight_bufs=1)        # single-buffered resident weights
    except Exception:
        y = call(weight_bufs=2)        # fallback: default double buffering
    return y[:B]


# --------------------------------------------------------------------------- #
# Params + pure-JAX reference
# --------------------------------------------------------------------------- #
def init_params(key, d_in, d_old, d_new, d_out):
    ks = jax.random.split(key, 7)
    scale = 0.05
    wo = scale * jax.random.normal(ks[0], (d_in, d_old), jnp.float32)
    bo = scale * jax.random.normal(ks[1], (1, d_old), jnp.float32)
    wn = scale * jax.random.normal(ks[2], (d_in, d_new), jnp.float32)
    bn = scale * jax.random.normal(ks[3], (1, d_new), jnp.float32)
    wi1 = scale * jax.random.normal(ks[4], (d_old, d_out), jnp.float32)
    wi2 = scale * jax.random.normal(ks[5], (d_new, d_out), jnp.float32)
    bi = scale * jax.random.normal(ks[6], (1, d_out), jnp.float32)
    return (wo, bo, wn, bn, wi1, wi2, bi)


def reference_forward(x, params):
    """Pure-JAX f32 reference: x1 = old(x), x2 = new(x), y = inter(x1, x2)."""
    wo, bo, wn, bn, wi1, wi2, bi = params
    x1 = x @ wo + bo
    x2 = x @ wn + bn
    w_cat = jnp.concatenate([wi1, wi2], axis=0)
    return jnp.concatenate([x1, x2], axis=-1) @ w_cat + bi


# --------------------------------------------------------------------------- #
# Demo / self-test
# --------------------------------------------------------------------------- #
if __name__ == "__main__":
    # Lane-friendly small shapes: feature dims multiples of 128; B=512 gives an
    # 8-step batch grid (tile_b=64) so the pipeline runs on every generation.
    B, D_IN, D_OLD, D_NEW, D_OUT = 512, 128, 128, 128, 128

    key = jax.random.PRNGKey(0)
    kx, kp = jax.random.split(key)
    x = jax.random.normal(kx, (B, D_IN), jnp.float32)
    params = init_params(kp, D_IN, D_OLD, D_NEW, D_OUT)

    prepared = prepare_params(params)          # one-time weight prep (cached)
    prepared = jax.block_until_ready(prepared)

    y = teacher_front_forward(x, prepared)
    y = jax.block_until_ready(y)

    y_ref = reference_forward(x, params)
    assert y.shape == (B, D_OUT)
    assert y.dtype == jnp.bfloat16
    # bf16 matmul operands + bf16 output vs f32 reference -> loose tolerance.
    assert jnp.allclose(y.astype(jnp.float32), y_ref, atol=2e-2, rtol=2e-2), \
        "mismatch vs reference"

    print("KERNEL_OK")
</pallas_src>

<mosaic_0001>
module attributes {stable_mosaic.version = 11 : i64} {
  func.func @teacher_front_kernel(%arg0: i32, %arg1: memref<64x128xf32, #tpu.memory_space<vmem>>, %arg2: memref<128x256xbf16, #tpu.memory_space<vmem>>, %arg3: memref<256x128xbf16, #tpu.memory_space<vmem>>, %arg4: memref<1x128xf32, #tpu.memory_space<vmem>>, %arg5: memref<64x128xbf16, #tpu.memory_space<vmem>>) attributes {dimension_semantics = [#tpu.dimension_semantics<parallel>], iteration_bounds = array<i64: 8>, scalar_prefetch = 0 : i64, scratch_operands = 0 : i64, tpu.core_type = #tpu.core_type<tc>, window_params = [{transform_indices = @transform_0, window_bounds = array<i64: 64, 128>}, {pipeline_mode = #tpu.pipeline_mode<synchronous>, transform_indices = @transform_1, window_bounds = array<i64: 128, 256>}, {pipeline_mode = #tpu.pipeline_mode<synchronous>, transform_indices = @transform_2, window_bounds = array<i64: 256, 128>}, {pipeline_mode = #tpu.pipeline_mode<synchronous>, transform_indices = @transform_3, window_bounds = array<i64: 1, 128>}, {transform_indices = @transform_4, window_bounds = array<i64: 64, 128>}]} {
    %c0 = arith.constant 0 : index
    %c0_0 = arith.constant 0 : index
    %0 = vector.load %arg1[%c0, %c0_0] : memref<64x128xf32, #tpu.memory_space<vmem>>, vector<64x128xf32>
    %1 = arith.truncf %0 : vector<64x128xf32> to vector<64x128xbf16>
    %c0_1 = arith.constant 0 : index
    %c0_2 = arith.constant 0 : index
    %2 = vector.load %arg2[%c0_1, %c0_2] : memref<128x256xbf16, #tpu.memory_space<vmem>>, vector<128x256xbf16>
    %cst = arith.constant dense<0.000000e+00> : vector<64x256xf32>
    %3 = tpu.matmul %1, %2, %cst {dimension_numbers = #tpu.dot_dimension_numbers<[1], [0], [0], [1], [0, 0, 1, 1], [], []>} : vector<64x128xbf16>, vector<128x256xbf16>, vector<64x256xf32> -> vector<64x256xf32>
    %4 = arith.truncf %3 : vector<64x256xf32> to vector<64x256xbf16>
    %c0_3 = arith.constant 0 : index
    %c0_4 = arith.constant 0 : index
    %5 = vector.load %arg3[%c0_3, %c0_4] : memref<256x128xbf16, #tpu.memory_space<vmem>>, vector<256x128xbf16>
    %cst_5 = arith.constant dense<0.000000e+00> : vector<64x128xf32>
    %6 = tpu.matmul %4, %5, %cst_5 {dimension_numbers = #tpu.dot_dimension_numbers<[1], [0], [0], [1], [0, 0, 1, 1], [], []>} : vector<64x256xbf16>, vector<256x128xbf16>, vector<64x128xf32> -> vector<64x128xf32>
    %c0_6 = arith.constant 0 : index
    %c0_7 = arith.constant 0 : index
    %7 = vector.load %arg4[%c0_6, %c0_7] : memref<1x128xf32, #tpu.memory_space<vmem>>, vector<1x128xf32>
    %8 = vector.broadcast %7 : vector<1x128xf32> to vector<64x128xf32>
    %9 = arith.addf %6, %8 : vector<64x128xf32>
    %10 = arith.truncf %9 : vector<64x128xf32> to vector<64x128xbf16>
    %c0_8 = arith.constant 0 : index
    %c0_9 = arith.constant 0 : index
    %11 = vector.load %arg5[%c0_8, %c0_9] : memref<64x128xbf16, #tpu.memory_space<vmem>>, vector<64x128xbf16>
    tpu.vector_store %arg5[%c0_8, %c0_9], %10 {strides = array<i32>} : memref<64x128xbf16, #tpu.memory_space<vmem>>, vector<64x128xbf16>,
    return
  }
  func.func @transform_0(%arg0: i32) -> (i32, i32) {
    %c0_i32 = arith.constant 0 : i32
    %c0_i32_0 = arith.constant 0 : i32
    return %arg0, %c0_i32 : i32, i32
  }
  func.func @transform_1(%arg0: i32) -> (i32, i32) {
    %c0_i32 = arith.constant 0 : i32
    %c0_i32_0 = arith.constant 0 : i32
    %c0_i32_1 = arith.constant 0 : i32
    return %c0_i32, %c0_i32_0 : i32, i32
  }
  func.func @transform_2(%arg0: i32) -> (i32, i32) {
    %c0_i32 = arith.constant 0 : i32
    %c0_i32_0 = arith.constant 0 : i32
    %c0_i32_1 = arith.constant 0 : i32
    return %c0_i32, %c0_i32_0 : i32, i32
  }
  func.func @transform_3(%arg0: i32) -> (i32, i32) {
    %c0_i32 = arith.constant 0 : i32
    %c0_i32_0 = arith.constant 0 : i32
    %c0_i32_1 = arith.constant 0 : i32
    return %c0_i32, %c0_i32_0 : i32, i32
  }
  func.func @transform_4(%arg0: i32) -> (i32, i32) {
    %c0_i32 = arith.constant 0 : i32
    %c0_i32_0 = arith.constant 0 : i32
    return %arg0, %c0_i32 : i32, i32
  }
}

module attributes {stable_mosaic.version = 11 : i64} {
  func.func @teacher_front_kernel(%arg0: i32, %arg1: memref<64x128xf32, #tpu.memory_space<vmem>>, %arg2: memref<128x256xbf16, #tpu.memory_space<vmem>>, %arg3: memref<256x128xbf16, #tpu.memory_space<vmem>>, %arg4: memref<1x128xf32, #tpu.memory_space<vmem>>, %arg5: memref<64x128xbf16, #tpu.memory_space<vmem>>) attributes {dimension_semantics = [#tpu.dimension_semantics<parallel>], iteration_bounds = array<i64: 8>, scalar_prefetch = 0 : i64, scratch_operands = 0 : i64, tpu.core_type = #tpu.core_type<tc>, window_params = [{transform_indices = @transform_0, window_bounds = array<i64: 64, 128>}, {pipeline_mode = #tpu.pipeline_mode<synchronous>, transform_indices = @transform_1, window_bounds = array<i64: 128, 256>}, {pipeline_mode = #tpu.pipeline_mode<synchronous>, transform_indices = @transform_2, window_bounds = array<i64: 256, 128>}, {pipeline_mode = #tpu.pipeline_mode<synchronous>, transform_indices = @transform_3, window_bounds = array<i64: 1, 128>}, {transform_indices = @transform_4, window_bounds = array<i64: 64, 128>}]} {
    %c0 = arith.constant 0 : index
    %c0_0 = arith.constant 0 : index
    %0 = vector.load %arg1[%c0, %c0_0] : memref<64x128xf32, #tpu.memory_space<vmem>>, vector<64x128xf32>
    %1 = arith.truncf %0 : vector<64x128xf32> to vector<64x128xbf16>
    %c0_1 = arith.constant 0 : index
    %c0_2 = arith.constant 0 : index
    %2 = vector.load %arg2[%c0_1, %c0_2] : memref<128x256xbf16, #tpu.memory_space<vmem>>, vector<128x256xbf16>
    %cst = arith.constant dense<0.000000e+00> : vector<64x256xf32>
    %3 = tpu.matmul %1, %2, %cst {dimension_numbers = #tpu.dot_dimension_numbers<[1], [0], [0], [1], [0, 0, 1, 1], [], []>} : vector<64x128xbf16>, vector<128x256xbf16>, vector<64x256xf32> -> vector<64x256xf32>
    %4 = arith.truncf %3 : vector<64x256xf32> to vector<64x256xbf16>
    %c0_3 = arith.constant 0 : index
    %c0_4 = arith.constant 0 : index
    %5 = vector.load %arg3[%c0_3, %c0_4] : memref<256x128xbf16, #tpu.memory_space<vmem>>, vector<256x128xbf16>
    %cst_5 = arith.constant dense<0.000000e+00> : vector<64x128xf32>
    %6 = tpu.matmul %4, %5, %cst_5 {dimension_numbers = #tpu.dot_dimension_numbers<[1], [0], [0], [1], [0, 0, 1, 1], [], []>} : vector<64x256xbf16>, vector<256x128xbf16>, vector<64x128xf32> -> vector<64x128xf32>
    %c0_6 = arith.constant 0 : index
    %c0_7 = arith.constant 0 : index
    %7 = vector.load %arg4[%c0_6, %c0_7] : memref<1x128xf32, #tpu.memory_space<vmem>>, vector<1x128xf32>
    %8 = vector.broadcast %7 : vector<1x128xf32> to vector<64x128xf32>
    %9 = arith.addf %6, %8 : vector<64x128xf32>
    %10 = arith.truncf %9 : vector<64x128xf32> to vector<64x128xbf16>
    %c0_8 = arith.constant 0 : index
    %c0_9 = arith.constant 0 : index
    %11 = vector.load %arg5[%c0_8, %c0_9] : memref<64x128xbf16, #tpu.memory_space<vmem>>, vector<64x128xbf16>
    tpu.vector_store %arg5[%c0_8, %c0_9], %10 {strides = array<i32>} : memref<64x128xbf16, #tpu.memory_space<vmem>>, vector<64x128xbf16>,
    return
  }
  func.func @transform_0(%arg0: i32) -> (i32, i32) {
    %c0_i32 = arith.constant 0 : i32
    %c0_i32_0 = arith.constant 0 : i32
    return %arg0, %c0_i32 : i32, i32
  }
  func.func @transform_1(%arg0: i32) -> (i32, i32) {
    %c0_i32 = arith.constant 0 : i32
    %c0_i32_0 = arith.constant 0 : i32
    %c0_i32_1 = arith.constant 0 : i32
    return %c0_i32, %c0_i32_0 : i32, i32
  }
  func.func @transform_2(%arg0: i32) -> (i32, i32) {
    %c0_i32 = arith.constant 0 : i32
    %c0_i32_0 = arith.constant 0 : i32
    %c0_i32_1 = arith.constant 0 : i32
    return %c0_i32, %c0_i32_0 : i32, i32
  }
  func.func @transform_3(%arg0: i32) -> (i32, i32) {
    %c0_i32 = arith.constant 0 : i32
    %c0_i32_0 = arith.constant 0 : i32
    %c0_i32_1 = arith.constant 0 : i32
    return %c0_i32, %c0_i32_0 : i32, i32
  }
  func.func @transform_4(%arg0: i32) -> (i32, i32) {
    %c0_i32 = arith.constant 0 : i32
    %c0_i32_0 = arith.constant 0 : i32
    return %arg0, %c0_i32 : i32, i32
  }
}

</mosaic_0001>

<bundles_post_ra>
// kernel: tpu_custom_call.1
= control target key start
LH: loop header
LB: loop body
LE: loop exit
PB: predicated region body
PF: predicated region fallthrough
CT: control target
= control target key end

     0   :  { %9 = vsyncpa [#allocation3], 0  ;;  %s1432_s0 = inlined_call_operand.hbm [shape: f32[512,128], index: 0, kind: input, shape index: {}]   ;;  %s1433_s1 = inlined_call_operand.hbm [shape: bf16[128,256], index: 1, kind: input, shape index: {}]   ;;  %s1434_s2 = inlined_call_operand.hbm [shape: bf16[256,128], index: 2, kind: input, shape index: {}]   ;;  %s1435_s3 = inlined_call_operand.vmem [shape: f32[1,128], index: 3, kind: input, shape index: {}]   ;;  %s1436_s4 = inlined_call_operand.hbm [shape: bf16[512,128], index: 4, kind: output, shape index: {}]  }
   0x1   :  { %11 = vsyncpa [#allocation3 + $0x1], 0 }
   0x2   :  { %12 = vsyncpa [#allocation6], 0 }
   0x3   :  { %13 = vsyncpa [#allocation4], 0 }
   0x4   :  { %15 = vsyncpa [#allocation4 + $0x1], 0  ;;  %s1215_s15 = smov 0   ;;  %s1217_s16 = smov 0  }
   0x5   :  { %s1219_s17 = smov 0   ;;  %s1221_s18 = smov 0  }
   0x6 LB: > { %s1236_s19 = sadd.s32 4294967295, %s1177_s18   ;;  %s783_s20 = sadd.s32 4294967294, %s1177_s18   ;;  %s1177_s18 = sphi %s1221_s18, %s1456_s18   ;;  %s1173_s17 = sphi %s1219_s17, %s1455_s17   ;;  %s1169_s16 = sphi %s1217_s16, %s1454_s16   ;;  %s1165_s15 = sphi %s1215_s15, %s1453_s15  }
   0x7   : > { %p41_p0 = scmp.ne.s32.totalorder %s1169_s16, %s1165_s15  ;;  %p1437_p1 = scmp.eq.s32.totalorder %s1236_s19, 0 }
   0x8   : > { %p128_p2 = scmp.eq.s32.totalorder %s1236_s19, 7  ;;  %p134_p3 = scmp.eq.s32.totalorder %s783_s20, 7 }
   0x9   : > { %p1245_p4 = por %p1437_p1, %p41_p0  ;;  %p784_p5 = scmp.ge.s32.totalorder %s1177_s18, 1 }
   0xa   : > { %p1250_p6 = por %p134_p3, %p41_p0  ;;  %p141_p7 = scmp.lt.s32.totalorder %s1177_s18, 9 }
   0xb   : > { %s1441_s21 = scalar_select %p1245_p4, 1, 0 }
   0xc   : > { %s1442_s22 = scalar_select %p1250_p6, 1, 0 }
   0xd   : > { %p1255_p8 = pnand %p784_p5, %p141_p7  ;;  %s1179_s24 = smov [#allocation5]  }
   0xe   : > { %s153_s25 = sshll.u32 %s1179_s24, 4  ;;  %s1180_s27 = smov [#allocation7]   ;;  %s154_s25 = int_to_ptr.vmem [resolvable:$true] %s153_s25 }
   0xf   : > { %s1443_s23 = scalar_select %p1255_p8, 1, 0 }
  0x10   : > { %p927_p9 = pneg %p1255_p8  ;;  %s166_s28 = sshll.u32 %s1180_s27, 4  ;;  %s167_s28 = int_to_ptr.vmem [resolvable:$true] %s166_s28 }
  0x11   : > { %s1040_s29 = scalar_lea.vmem %s154_s25, 2048  ;;  %p1048_p3 = scmp.lt.s32.totalorder %s154_s25, %s154_s25 }
  0x12   : > { %p1263_p10 = pnand %p927_p9, %p1437_p1  ;;  %p1041_p12 = scmp.ne.s32.totalorder %s154_s25, %s1040_s29 }
  0x13   : > { %p1049_p5 = scmp.lt.s32.totalorder %s1040_s29, %s1040_s29 }
  0x14   : > { %p1031_p11 = pneg %p1263_p10 }
  0x15   : > { %p1050_p7 = por %p1049_p5, %p1048_p3 }
  0x16   : > { %p1043_p13 = pnand %p1041_p12, %p1031_p11 }
  0x18   : > { %p1044_p0 = pneg %p1043_p13 }
  0x1a   : > { %p1051_p9 = pnand %p1050_p7, %p1044_p0 }
  0x1c   : > { %1054 = shalt.err (!%p1051_p9)
}
  0x1d   : > { %s1181_s30 = smov 128   ;;  %s1182_s5 = smov 8  }
  0x1e   : > { %930 = dma.hbm_to_vmem [thread:$0]  (!%p1263_p10), %s1433_s1, 2048, %s154_s25, [#allocation6], %s1181_s30, %s1181_s30, %s1182_s5  }
  0x1f   : > { %s1066_s8 = scalar_lea.vmem %s167_s28, 2048  ;;  %p1074_p0 = scmp.lt.s32.totalorder %s167_s28, %s167_s28 }
  0x20   : > { %p1067_p12 = scmp.ne.s32.totalorder %s167_s28, %s1066_s8  ;;  %p1075_p5 = scmp.lt.s32.totalorder %s1066_s8, %s1066_s8 }
  0x22   : > { %p1069_p13 = pnand %p1067_p12, %p1031_p11  ;;  %p1076_p7 = por %p1075_p5, %p1074_p0 }
  0x24   : > { %p1070_p3 = pneg %p1069_p13 }
  0x26   : > { %p1077_p9 = pnand %p1076_p7, %p1070_p3 }
  0x28   : > { %1080 = shalt.err (!%p1077_p9)
}
  0x29   : > { %s1183_s9 = smov 64   ;;  %s1184_s10 = smov 4  }
  0x2a   : > { %933 = dma.hbm_to_vmem [thread:$0]  (!%p1263_p10), %s1434_s2, 2048, %s167_s28, [#allocation6], %s1183_s9, %s1183_s9, %s1184_s10  }
  0x2b   : > { %s1289_s13 = sadd.s32 1, %s1177_s18   ;;  %s28_s20 = sadd.s32 1, %s1173_s17 }
  0x2c   : > { %s25_s14 = ssub.s32 %s1177_s18, %s1289_s13  ;;  %p35_p12 = scmp.ne.s32.totalorder %s1173_s17, %s1169_s16 }
  0x2d   : > { %p26_p11 = scmp.eq.s32.totalorder %s25_s14, 0  ;;  %p36_p13 = scmp.eq.s32.totalorder %s1177_s18, 0 }
  0x2e   : > { %p1302_p0 = por %p128_p2, %p35_p12  ;;  %p944_p5 = scmp.lt.s32.totalorder %s1177_s18, 8 }
  0x2f   : > { %s1298_s24 = scalar_select %p26_p11, %s1173_s17, %s28_s20  }
  0x30   : > { %p37_p3 = por %p36_p13, %p35_p12  ;;  %s183_s26 = sand.u32 1, %s1173_s17  }
  0x31   : > { %s1445_s25 = scalar_select %p1302_p0, 1, 0 }
  0x32   : > { %s788_s27 = sshll.u32 %s183_s26, 6  ;;  %s842_s28 = sshll.u32 %s1177_s18, 10 }
  0x33   : > { %s1312_s7 = scalar_lea.hbm %s1432_s0, %s842_s28  ;;  %s187_s8 = scalar_lea.vmem [#allocation2], %s788_s27 }
  0x34   : > { %s194_s9 = sshll.u32 %s187_s8, 4  ;;  %p1316_p2 = pnand %p944_p5, %p37_p3  ;;  %s1314_s9 = int_to_ptr.vmem [resolvable:$true] %s194_s9 }
  0x35   : > { %s1320_s11 = scalar_lea.sflag [#allocation3], %s183_s26  ;;  %s1081_s12 = scalar_lea.hbm %s1312_s7, 1024 }
  0x36   : > { %p1082_p10 = scmp.ne.s32.totalorder %s1312_s7, %s1081_s12  ;;  %p1083_p7 = pneg %p1316_p2 }
  0x37   : > { %s1086_s27 = scalar_lea.hbm %s1432_s0, 8192  ;;  %p1087_p12 = scmp.lt.s32.totalorder %s1312_s7, %s1432_s0 }
  0x38   : > { %p1084_p9 = pnand %p1083_p7, %p1082_p10  ;;  %p1088_p13 = scmp.lt.s32.totalorder %s1086_s27, %s1081_s12 }
  0x3a   : > { %p1085_p11 = pneg %p1084_p9  ;;  %p1089_p3 = por %p1088_p13, %p1087_p12 }
  0x3c   : > { %p1090_p5 = pnand %p1089_p3, %p1085_p11 }
  0x3e   : > { %1093 = shalt.err (!%p1090_p5)
}
  0x3f   : > { %s1094_s26 = scalar_lea.vmem %s1314_s9, 1024  ;;  %s1185_s6 = smov [#allocation2]  }
  0x40   : > { %p1095_p1 = scmp.ne.s32.totalorder %s1314_s9, %s1094_s26  ;;  %s1099_s8 = sshll.u32 %s1185_s6, 4  ;;  %s1100_s8 = int_to_ptr.vmem [resolvable:$false] %s1099_s8 }
  0x41   : > { %s1101_s14 = scalar_lea.vmem %s1100_s8, 2048  ;;  %p1102_p9 = scmp.lt.s32.totalorder %s1314_s9, %s1100_s8 }
  0x42   : > { %p1097_p6 = pnand %p1095_p1, %p1083_p7  ;;  %p1103_p0 = scmp.lt.s32.totalorder %s1101_s14, %s1094_s26 }
  0x44   : > { %p1098_p10 = pneg %p1097_p6  ;;  %p1104_p4 = por %p1103_p0, %p1102_p9 }
  0x46   : > { %p1105_p8 = pnand %p1104_p4, %p1098_p10 }
  0x48   : > { %1108 = shalt.err (!%p1105_p8)
}
  0x49   : > { %937 = dma.hbm_to_vmem [thread:$0]  (!%p1316_p2), %s1312_s7, 1024, %s1314_s9, %s1320_s11, %s1181_s30, %s1181_s30, %s1182_s5  }
  0x4a   : > { %p1447_p1 = scmp.ne.s32.totalorder %s1443_s23, 0 }
  0x4b   : > { %s1347_s12 = sand.u32 (!%p1447_p1), 1, %s1169_s16   ;;  %p1448_p4 = scmp.ne.s32.totalorder (!%p1447_p1), %s1441_s21, 0 }
  0x4c   : > { %206 = sbr.rel (%p1447_p1) target bundleno = 563 (0x233), region = 36  ;;  %s792_s20 = sshll.u32 (!%p1447_p1), %s1347_s12, 6 }
  0x4d   : > { %s209_s27 = scalar_lea.sflag (!%p1447_p1), [#allocation3], %s1347_s12  ;;  %s1351_s28 = scalar_lea.vmem (!%p1447_p1), [#allocation2], %s792_s20 }
  0x51   : > { %1152 = dma.done.wait (%p1448_p4), %s209_s27, 1024  }
  0x52   : > { %1154 = vsyncadd (%p1448_p4), %s209_s27, 4294966272  ;;  %p1449_p6 = scmp.eq.s32.totalorder %s1236_s19, 0 }
  0x54   : > { %1156 = dma.done.wait (%p1449_p6), [#allocation6], 4096   ;;  %p1450_p8 = pmov %p1449_p6 }
  0x55   : > { %v1186_v0 = vmov 0   ;;  %v989_v1 = vld [vmem:[#allocation5 + $0x74] ss:$8 sps:$4 sm:$0xff]   ;;  %v991_v2 = vld [vmem:[#allocation5 + $0x70] ss:$8 sps:$4 sm:$0xff]   ;;  %v1017_v16 = vld [vmem:[#allocation7 + $0x68] sm:$0xff]  }
  0x56   : > { %1158 = vsyncadd (%p1450_p8), [#allocation6], 4294963200  ;;  %388 = vmatprep.mubr.bf16.mxu0 %v1186_v0  ;;  %356 = vmatprep.subr.bf16.mxu0 %v989_v1  ;;  %v992_v3 = vld [vmem:[#allocation5 + $0x64] ss:$8 sps:$4 sm:$0xff]   ;;  %v994_v4 = vld [vmem:[#allocation5 + $0x60] ss:$8 sps:$4 sm:$0xff]  }
  0x57   : > { %357 = vmatpush1.bf16.msra.mxu0 %v991_v2  ;;  %v995_v5 = vld [vmem:[#allocation5 + $0x54] ss:$8 sps:$4 sm:$0xff]   ;;  %v997_v6 = vld [vmem:[#allocation5 + $0x50] ss:$8 sps:$4 sm:$0xff]   ;;  %v998_v7 = vld [vmem:[#allocation5 + $0x44] ss:$8 sps:$4 sm:$0xff]  }
  0x58   : > { %358 = vmatprep.subr.bf16.mxu0 %v992_v3  ;;  %v1000_v8 = vld [vmem:[#allocation5 + $0x40] ss:$8 sps:$4 sm:$0xff]   ;;  %v1001_v9 = vld [vmem:[#allocation5 + $0x34] ss:$8 sps:$4 sm:$0xff]   ;;  %v1003_v10 = vld [vmem:[#allocation5 + $0x30] ss:$8 sps:$4 sm:$0xff]  }
  0x59   : > { %v1004_v11 = vld [vmem:[#allocation5 + $0x24] ss:$8 sps:$4 sm:$0xff]   ;;  %v1013_v12 = vld [vmem:[#allocation7 + $0x78] sm:$0xff]   ;;  %v1015_v14 = vld [vmem:[#allocation7 + $0x70] sm:$0xff]   ;;  %s795_s30 = sshll.u32 %s1347_s12, 5  ;;  %s851_s9 = sshll.u32 %s1236_s19, 9 }
  0x5a   : > { %v1014_v13 = vld [vmem:[#allocation7 + $0x38] sm:$0xff]   ;;  %875 = vmatprep.subr.bf16.mxu1 %v1013_v12  ;;  %v1016_v15 = vld [vmem:[#allocation7 + $0x30] sm:$0xff]   ;;  %v1006_v17 = vld [vmem:[#allocation5 + $0x20] ss:$8 sps:$4 sm:$0xff]   ;;  %s1377_s5 = scalar_lea.vmem [#allocation8], %s795_s30  ;;  %s1389_s29 = scalar_lea.hbm %s1436_s4, %s851_s9 }
  0x5b   : > { %359 = vmatpush1.bf16.msra.mxu0 %v994_v4  ;;  %876 = vmatpush3.bf16.msra.mxu1 %v1014_v13  ;;  %v1007_v18 = vld [vmem:[#allocation5 + $0x14] ss:$8 sps:$4 sm:$0xff]   ;;  %v1009_v19 = vld [vmem:[#allocation5 + $0x10] ss:$8 sps:$4 sm:$0xff]   ;;  %v1018_v20 = vld [vmem:[#allocation7 + $0x28] sm:$0xff]   ;;  %s691_s7 = sshll.u32 %s1377_s5, 4  ;;  %s1384_s7 = int_to_ptr.vmem [resolvable:$true] %s691_s7 }
  0x5c   : > { %360 = vmatprep.subr.bf16.mxu0 %v995_v5  ;;  %877 = vmatprep.subr.bf16.mxu1 %v1015_v14  ;;  %v1019_v21 = vld [vmem:[#allocation7 + $0x60] sm:$0xff]   ;;  %v249_v26 = vld [vmem:[%s1351_s28 + $0x8] sm:$0xff]  ;;  %v1021_v27 = vld [vmem:[#allocation7 + $0x58] sm:$0xff]   ;;  %s678_s26 = scalar_lea.sflag [#allocation4], %s1347_s12  ;;  %s1109_s6 = scalar_lea.vmem %s1384_s7, 512 }
  0x5d   : > { %v1010_v22 = vld [vmem:[#allocation5 + $0x4] ss:$8 sps:$4 sm:$0xff]   ;;  %v1012_v24 = vld [vmem:[#allocation5] ss:$8 sps:$4 sm:$0xff]   ;;  %v1022_v28 = vld [vmem:[#allocation7 + $0x18] sm:$0xff]   ;;  %p1110_p0 = scmp.ne.s32.totalorder %s1384_s7, %s1109_s6  ;;  %p1451_p2 = scmp.ne.s32.totalorder %s1445_s25, 0 }
  0x5e   : > { %v1020_v23 = vld [vmem:[#allocation7 + $0x20] sm:$0xff]   ;;  %v1023_v30 = vld [vmem:[#allocation7 + $0x50] sm:$0xff]   ;;  %v251_v33 = vld [vmem:[%s1351_s28 + $0x18] sm:$0xff]  ;;  %s1187_s19 = smov [#allocation8]  }
  0x5f   : > { %361 = vmatpush1.bf16.msra.mxu0 %v997_v6  ;;  %878 = vmatpush3.bf16.msra.mxu1 %v1016_v15  ;;  %v248_v25 = vld [vmem:[%s1351_s28] sm:$0xff]  ;;  %v1024_v31 = vld [vmem:[#allocation7 + $0x10] sm:$0xff]   ;;  %v253_v36 = vld [vmem:[%s1351_s28 + $0x28] sm:$0xff]  ;;  %p1111_p7 = pnand %p1110_p0, %p1451_p2  ;;  %s1113_s8 = sshll.u32 %s1187_s19, 4  ;;  %s1114_s8 = int_to_ptr.vmem [resolvable:$false] %s1113_s8 }
  0x60   : > { %362 = vmatprep.subr.bf16.mxu0 %v998_v7  ;;  %879 = vmatprep.subr.bf16.mxu1 %v1017_v16  ;;  %v256_v29 = vpack.c.bf16 %v249_v26, %v248_v25  ;;  %v250_v32 = vld [vmem:[%s1351_s28 + $0x10] sm:$0xff]  ;;  %v252_v35 = vld [vmem:[%s1351_s28 + $0x20] sm:$0xff]  ;;  %v255_v39 = vld [vmem:[%s1351_s28 + $0x38] sm:$0xff]  ;;  %s1115_s14 = scalar_lea.vmem %s1114_s8, 1024  ;;  %p1116_p12 = scmp.lt.s32.totalorder %s1384_s7, %s1114_s8 }
  0x61   : > { %v257_v34 = vpack.c.bf16 %v251_v33, %v250_v32  ;;  %v258_v37 = vpack.c.bf16 %v253_v36, %v252_v35  ;;  %v254_v38 = vld [vmem:[%s1351_s28 + $0x30] sm:$0xff]  ;;  %v1025_v41 = vld [vmem:[#allocation7 + $0x48] sm:$0xff]   ;;  %v1027_v43 = vld [vmem:[#allocation7 + $0x40] sm:$0xff]   ;;  %p1112_p11 = pneg %p1111_p7  ;;  %p1117_p13 = scmp.lt.s32.totalorder %s1115_s14, %s1109_s6 }
  0x62   : > { %v259_v40 = vpack.c.bf16 %v255_v39, %v254_v38  ;;  %v1026_v42 = vld [vmem:[#allocation7 + $0x8] sm:$0xff]   ;;  %v1028_v44 = vld [vmem:[#allocation7] sm:$0xff]  }
  0x63   : > { %363 = vmatpush1.bf16.msra.mxu0 %v1000_v8  ;;  %880 = vmatpush3.bf16.msra.mxu1 %v1018_v20  ;;  %p1118_p3 = por %p1117_p13, %p1116_p12 }
  0x64   : > { %364 = vmatprep.subr.bf16.mxu0 %v1001_v9  ;;  %881 = vmatprep.subr.bf16.mxu1 %v1019_v21  ;;  %v812_v9 = vld [vmem:[%s1435_s3] ss:$0 sm:$0xff] }
  0x65   : > { %p1119_p5 = pnand %p1118_p3, %p1112_p11 }
  0x67   : > { %365 = vmatpush1.bf16.msra.mxu0 %v1003_v10  ;;  %882 = vmatpush3.bf16.msra.mxu1 %v1020_v23 }
  0x68   : > { %366 = vmatprep.subr.bf16.mxu0 %v1004_v11  ;;  %883 = vmatprep.subr.bf16.mxu1 %v1021_v27 }
  0x6b   : > { %367 = vmatpush1.bf16.msra.mxu0 %v1006_v17  ;;  %884 = vmatpush3.bf16.msra.mxu1 %v1022_v28 }
  0x6c   : > { %368 = vmatprep.subr.bf16.mxu0 %v1007_v18  ;;  %885 = vmatprep.subr.bf16.mxu1 %v1023_v30 }
  0x6f   : > { %369 = vmatpush1.bf16.msra.mxu0 %v1009_v19  ;;  %886 = vmatpush3.bf16.msra.mxu1 %v1024_v31 }
  0x70   : > { %370 = vmatprep.subr.bf16.mxu0 %v1010_v22  ;;  %887 = vmatprep.subr.bf16.mxu1 %v1025_v41 }
  0x73   : > { %371 = vmatpush1.bf16.msra.mxu0 %v1012_v24  ;;  %888 = vmatpush3.bf16.msra.mxu1 %v1026_v42 }
  0x74   : > { %889 = vmatprep.subr.bf16.mxu1 %v1027_v43 }
  0x76   : > { %389 = vmatmul.mubr.bf16.vlgmr.msra.gmra.mxu0 %v256_v29 }
  0x77   : > { %398 = vmatprep.mubr.bf16.mxu0 %v1186_v0  ;;  %890 = vmatpush3.bf16.msra.mxu1 %v1028_v44 }
  0x7e   : > { %399 = vmatmul.mubr.bf16.gmra.mxu0 %v257_v34 }
  0x7f   : > { %408 = vmatprep.mubr.bf16.mxu0 %v1186_v0 }
  0x86   : > { %409 = vmatmul.mubr.bf16.gmra.mxu0 %v258_v37 }
  0x87   : > { %418 = vmatprep.mubr.bf16.mxu0 %v1186_v0 }
  0x8e   : > { %419 = vmatmul.mubr.bf16.gmra.mxu0 %v259_v40 }
 0x136   : > { %v390_v45 = vpop.f32.mrf.mxu0 }
 0x138   : > { %v392_v46 = vpop.f32.mrf.mxu0 }
 0x13a   : > { %v394_v47 = vpop.f32.mrf.mxu0 }
 0x13b   : > { %v429_v50 = vpack.c.bf16 %v394_v47, %v390_v45 }
 0x13c   : > { %v396_v48 = vpop.f32.mrf.mxu0 }
 0x13d   : > { %v430_v49 = vpack.c.bf16 %v396_v48, %v392_v46 }
 0x13e   : > { %v400_v51 = vpop.f32.mrf.mxu0 }
 0x13f   : > { %604 = vmatprep.mubr.bf16.mxu1 %v430_v49 }
 0x140   : > { %v402_v52 = vpop.f32.mrf.mxu0  ;;  %605 = vmatmul.mubr.bf16.vlgmr.msra.gmra.mxu1 %v429_v50 }
 0x142   : > { %v404_v53 = vpop.f32.mrf.mxu0 }
 0x143   : > { %v431_v56 = vpack.c.bf16 %v404_v53, %v400_v51 }
 0x144   : > { %v406_v54 = vpop.f32.mrf.mxu0 }
 0x145   : > { %v432_v55 = vpack.c.bf16 %v406_v54, %v402_v52 }
 0x146   : > { %v410_v57 = vpop.f32.mrf.mxu0 }
 0x147   : > { %612 = vmatprep.mubr.bf16.mxu1 %v432_v55 }
 0x148   : > { %v412_v58 = vpop.f32.mrf.mxu0  ;;  %613 = vmatmul.mubr.bf16.gmra.mxu1 %v431_v56 }
 0x14a   : > { %v414_v59 = vpop.f32.mrf.mxu0 }
 0x14b   : > { %v433_v62 = vpack.c.bf16 %v414_v59, %v410_v57 }
 0x14c   : > { %v416_v60 = vpop.f32.mrf.mxu0 }
 0x14d   : > { %v434_v61 = vpack.c.bf16 %v416_v60, %v412_v58 }
 0x14e   : > { %v420_v63 = vpop.f32.mrf.mxu0 }
 0x14f   : > { %620 = vmatprep.mubr.bf16.mxu1 %v434_v61 }
 0x150   : > { %v422_v0 = vpop.f32.mrf.mxu0  ;;  %621 = vmatmul.mubr.bf16.gmra.mxu1 %v433_v62 }
 0x152   : > { %v424_v1 = vpop.f32.mrf.mxu0 }
 0x153   : > { %v435_v4 = vpack.c.bf16 %v424_v1, %v420_v63 }
 0x154   : > { %v426_v2 = vpop.f32.mrf.mxu0 }
 0x155   : > { %v436_v3 = vpack.c.bf16 %v426_v2, %v422_v0 }
 0x157   : > { %628 = vmatprep.mubr.bf16.mxu1 %v436_v3 }
 0x158   : > { %629 = vmatmul.mubr.bf16.gmra.mxu1 %v435_v4 }
 0x200   : > { %v891_v5 = vpop.f32.mrf.mxu1 }
 0x202   : > { %v892_v6 = vpop.f32.mrf.mxu1 }
 0x203   : > { %v893_v8 = vadd.f32 %v892_v6, %v891_v5 }
 0x204   : > { %v894_v7 = vpop.f32.mrf.mxu1 }
 0x205   : > { %v607_v13 = vadd.f32 %v893_v8, %v812_v9 }
 0x206   : > { %v895_v10 = vpop.f32.mrf.mxu1 }
 0x207   : > { %v896_v11 = vadd.f32 %v895_v10, %v894_v7 }
 0x208   : > { %v897_v12 = vpop.f32.mrf.mxu1 }
 0x209   : > { %v610_v14 = vadd.f32 %v896_v11, %v812_v9 }
 0x20a   : > { %v898_v15 = vpop.f32.mrf.mxu1 }
 0x20b   : > { %v855_v16 = vpack.c.bf16 %v610_v14, %v607_v13  ;;  %v899_v18 = vadd.f32 %v898_v15, %v897_v12 }
 0x20c   : > { %v900_v17 = vpop.f32.mrf.mxu1 }
 0x20d   : > { %856 = vst [vmem:[%s1377_s5] sm:$0xff] %v855_v16   ;;  %v615_v22 = vadd.f32 %v899_v18, %v812_v9 }
 0x20e   : > { %v901_v19 = vpop.f32.mrf.mxu1 }
 0x20f   : > { %v902_v20 = vadd.f32 %v901_v19, %v900_v17 }
 0x210   : > { %v903_v21 = vpop.f32.mrf.mxu1 }
 0x211   : > { %v618_v23 = vadd.f32 %v902_v20, %v812_v9 }
 0x212   : > { %v904_v24 = vpop.f32.mrf.mxu1 }
 0x213   : > { %v860_v25 = vpack.c.bf16 %v618_v23, %v615_v22  ;;  %v905_v27 = vadd.f32 %v904_v24, %v903_v21 }
 0x214   : > { %v906_v26 = vpop.f32.mrf.mxu1 }
 0x215   : > { %872 = vst [vmem:[%s1377_s5 + $0x8] sm:$0xff] %v860_v25   ;;  %v623_v31 = vadd.f32 %v905_v27, %v812_v9 }
 0x216   : > { %v907_v28 = vpop.f32.mrf.mxu1 }
 0x217   : > { %v908_v29 = vadd.f32 %v907_v28, %v906_v26 }
 0x218   : > { %v909_v30 = vpop.f32.mrf.mxu1 }
 0x219   : > { %v626_v32 = vadd.f32 %v908_v29, %v812_v9 }
 0x21a   : > { %v910_v33 = vpop.f32.mrf.mxu1 }
 0x21b   : > { %v865_v34 = vpack.c.bf16 %v626_v32, %v623_v31  ;;  %v911_v36 = vadd.f32 %v910_v33, %v909_v30 }
 0x21c   : > { %v912_v35 = vpop.f32.mrf.mxu1 }
 0x21d   : > { %873 = vst [vmem:[%s1377_s5 + $0x10] sm:$0xff] %v865_v34   ;;  %v631_v39 = vadd.f32 %v911_v36, %v812_v9 }
 0x21e   : > { %v913_v37 = vpop.f32.mrf.mxu1 }
 0x21f   : > { %v914_v38 = vadd.f32 %v913_v37, %v912_v35 }
 0x221   : > { %v634_v40 = vadd.f32 %v914_v38, %v812_v9 }
 0x223   : > { %v870_v41 = vpack.c.bf16 %v634_v40, %v631_v39 }
 0x225   : > { %874 = vst [vmem:[%s1377_s5 + $0x18] sm:$0xff] %v870_v41  }
 0x226   : > { %1122 = shalt.err (!%p1119_p5)
}
 0x227   : > { %s1123_s20 = scalar_lea.hbm %s1389_s29, 512  ;;  %s1127_s21 = scalar_lea.hbm %s1436_s4, 4096 }
 0x228   : > { %p1124_p10 = scmp.ne.s32.totalorder %s1389_s29, %s1123_s20  ;;  %p1128_p4 = scmp.lt.s32.totalorder %s1389_s29, %s1436_s4 }
 0x229   : > { %p1129_p6 = scmp.lt.s32.totalorder %s1127_s21, %s1123_s20 }
 0x22a   : > { %p1125_p9 = pnand %p1124_p10, %p1451_p2 }
 0x22b   : > { %p1130_p8 = por %p1129_p6, %p1128_p4 }
 0x22c   : > { %p1126_p1 = pneg %p1125_p9 }
 0x22e   : > { %p1131_p0 = pnand %p1130_p8, %p1126_p1 }
 0x230   : > { %1134 = shalt.err (!%p1131_p0)
}
 0x231   : > { %s1188_s5 = smov 64   ;;  %s1189_s9 = smov 4  }
 0x232   : > { %925 = dma.vmem_to_hbm [thread:$0]  (%p1451_p2), %s1384_s7, 512, %s1389_s29, %s678_s26, %s1188_s5, %s1188_s5, %s1189_s9  }
 0x233 PF: > { %p947_p7 = scmp.ge.s32.totalorder %s1177_s18, 2  ;;  %s706_s10 = sand.u32 1, %s1165_s15  }
 0x234   : > { %p1452_p11 = scmp.ne.s32.totalorder %s1442_s22, 0  ;;  %s707_s11 = scalar_lea.sflag [#allocation4], %s706_s10 }
 0x236   : > { %p939_p12 = pnand %p947_p7, %p1452_p11 }
 0x238   : > { %p940_p13 = pneg %p939_p12 }
 0x23a   : > { %1160 = dma.done.wait (%p940_p13), %s707_s11, 512  }
 0x23b   : > { %1162 = vsyncadd (%p940_p13), %s707_s11, 4294966784  ;;  %p18_p3 = scmp.ge.s32.totalorder %s1289_s13, 10   ;;  %s1453_s15 = smov %s1169_s16 }
 0x23c   : > { %s1454_s16 = smov %s1173_s17  ;;  %s1455_s17 = smov %s1298_s24 }
 0x23d   : > { %s1456_s18 = smov %s1289_s13  ;;  %20 = sbr.rel (!%p18_p3) target bundleno = 6 (0x6), region = 89 }
 0x242   :  { %712 = vsyncpa [#allocation3], 1 }
 0x243   :  { %714 = vsyncpa [#allocation3 + $0x1], 1 }
 0x244   :  { %715 = vsyncpa [#allocation6], 1 }
 0x245   :  { %716 = vsyncpa [#allocation4], 1 }
 0x246   :  { %718 = vsyncpa [#allocation4 + $0x1], 1 }

// kernel: tpu_custom_call.1
= control target key start
LH: loop header
LB: loop body
LE: loop exit
PB: predicated region body
PF: predicated region fallthrough
CT: control target
= control target key end

     0   :  { %9 = vsyncpa [#allocation3], 0  ;;  %s1432_s0 = inlined_call_operand.hbm [shape: f32[512,128], index: 0, kind: input, shape index: {}]   ;;  %s1433_s1 = inlined_call_operand.hbm [shape: bf16[128,256], index: 1, kind: input, shape index: {}]   ;;  %s1434_s2 = inlined_call_operand.hbm [shape: bf16[256,128], index: 2, kind: input, shape index: {}]   ;;  %s1435_s3 = inlined_call_operand.vmem [shape: f32[1,128], index: 3, kind: input, shape index: {}]   ;;  %s1436_s4 = inlined_call_operand.hbm [shape: bf16[512,128], index: 4, kind: output, shape index: {}]  }
   0x1   :  { %11 = vsyncpa [#allocation3 + $0x1], 0 }
   0x2   :  { %12 = vsyncpa [#allocation6], 0 }
   0x3   :  { %13 = vsyncpa [#allocation4], 0 }
   0x4   :  { %15 = vsyncpa [#allocation4 + $0x1], 0  ;;  %s1215_s15 = smov 0   ;;  %s1217_s16 = smov 0  }
   0x5   :  { %s1219_s17 = smov 0   ;;  %s1221_s18 = smov 0  }
   0x6 LB: > { %s1236_s19 = sadd.s32 4294967295, %s1177_s18   ;;  %s783_s20 = sadd.s32 4294967294, %s1177_s18   ;;  %s1177_s18 = sphi %s1221_s18, %s1456_s18   ;;  %s1173_s17 = sphi %s1219_s17, %s1455_s17   ;;  %s1169_s16 = sphi %s1217_s16, %s1454_s16   ;;  %s1165_s15 = sphi %s1215_s15, %s1453_s15  }
   0x7   : > { %p41_p0 = scmp.ne.s32.totalorder %s1169_s16, %s1165_s15  ;;  %p1437_p1 = scmp.eq.s32.totalorder %s1236_s19, 0 }
   0x8   : > { %p128_p2 = scmp.eq.s32.totalorder %s1236_s19, 7  ;;  %p134_p3 = scmp.eq.s32.totalorder %s783_s20, 7 }
   0x9   : > { %p1245_p4 = por %p1437_p1, %p41_p0  ;;  %p784_p5 = scmp.ge.s32.totalorder %s1177_s18, 1 }
   0xa   : > { %p1250_p6 = por %p134_p3, %p41_p0  ;;  %p141_p7 = scmp.lt.s32.totalorder %s1177_s18, 9 }
   0xb   : > { %s1441_s21 = scalar_select %p1245_p4, 1, 0 }
   0xc   : > { %s1442_s22 = scalar_select %p1250_p6, 1, 0 }
   0xd   : > { %p1255_p8 = pnand %p784_p5, %p141_p7  ;;  %s1179_s24 = smov [#allocation5]  }
   0xe   : > { %s153_s25 = sshll.u32 %s1179_s24, 4  ;;  %s1180_s27 = smov [#allocation7]   ;;  %s154_s25 = int_to_ptr.vmem [resolvable:$true] %s153_s25 }
   0xf   : > { %s1443_s23 = scalar_select %p1255_p8, 1, 0 }
  0x10   : > { %p927_p9 = pneg %p1255_p8  ;;  %s166_s28 = sshll.u32 %s1180_s27, 4  ;;  %s167_s28 = int_to_ptr.vmem [resolvable:$true] %s166_s28 }
  0x11   : > { %s1040_s29 = scalar_lea.vmem %s154_s25, 2048  ;;  %p1048_p3 = scmp.lt.s32.totalorder %s154_s25, %s154_s25 }
  0x12   : > { %p1263_p10 = pnand %p927_p9, %p1437_p1  ;;  %p1041_p12 = scmp.ne.s32.totalorder %s154_s25, %s1040_s29 }
  0x13   : > { %p1049_p5 = scmp.lt.s32.totalorder %s1040_s29, %s1040_s29 }
  0x14   : > { %p1031_p11 = pneg %p1263_p10 }
  0x15   : > { %p1050_p7 = por %p1049_p5, %p1048_p3 }
  0x16   : > { %p1043_p13 = pnand %p1041_p12, %p1031_p11 }
  0x18   : > { %p1044_p0 = pneg %p1043_p13 }
  0x1a   : > { %p1051_p9 = pnand %p1050_p7, %p1044_p0 }
  0x1c   : > { %1054 = shalt.err (!%p1051_p9)
}
  0x1d   : > { %s1181_s30 = smov 128   ;;  %s1182_s5 = smov 8  }
  0x1e   : > { %930 = dma.hbm_to_vmem [thread:$0]  (!%p1263_p10), %s1433_s1, 2048, %s154_s25, [#allocation6], %s1181_s30, %s1181_s30, %s1182_s5  }
  0x1f   : > { %s1066_s8 = scalar_lea.vmem %s167_s28, 2048  ;;  %p1074_p0 = scmp.lt.s32.totalorder %s167_s28, %s167_s28 }
  0x20   : > { %p1067_p12 = scmp.ne.s32.totalorder %s167_s28, %s1066_s8  ;;  %p1075_p5 = scmp.lt.s32.totalorder %s1066_s8, %s1066_s8 }
  0x22   : > { %p1069_p13 = pnand %p1067_p12, %p1031_p11  ;;  %p1076_p7 = por %p1075_p5, %p1074_p0 }
  0x24   : > { %p1070_p3 = pneg %p1069_p13 }
  0x26   : > { %p1077_p9 = pnand %p1076_p7, %p1070_p3 }
  0x28   : > { %1080 = shalt.err (!%p1077_p9)
}
  0x29   : > { %s1183_s9 = smov 64   ;;  %s1184_s10 = smov 4  }
  0x2a   : > { %933 = dma.hbm_to_vmem [thread:$0]  (!%p1263_p10), %s1434_s2, 2048, %s167_s28, [#allocation6], %s1183_s9, %s1183_s9, %s1184_s10  }
  0x2b   : > { %s1289_s13 = sadd.s32 1, %s1177_s18   ;;  %s28_s20 = sadd.s32 1, %s1173_s17 }
  0x2c   : > { %s25_s14 = ssub.s32 %s1177_s18, %s1289_s13  ;;  %p35_p12 = scmp.ne.s32.totalorder %s1173_s17, %s1169_s16 }
  0x2d   : > { %p26_p11 = scmp.eq.s32.totalorder %s25_s14, 0  ;;  %p36_p13 = scmp.eq.s32.totalorder %s1177_s18, 0 }
  0x2e   : > { %p1302_p0 = por %p128_p2, %p35_p12  ;;  %p944_p5 = scmp.lt.s32.totalorder %s1177_s18, 8 }
  0x2f   : > { %s1298_s24 = scalar_select %p26_p11, %s1173_s17, %s28_s20  }
  0x30   : > { %p37_p3 = por %p36_p13, %p35_p12  ;;  %s183_s26 = sand.u32 1, %s1173_s17  }
  0x31   : > { %s1445_s25 = scalar_select %p1302_p0, 1, 0 }
  0x32   : > { %s788_s27 = sshll.u32 %s183_s26, 6  ;;  %s842_s28 = sshll.u32 %s1177_s18, 10 }
  0x33   : > { %s1312_s7 = scalar_lea.hbm %s1432_s0, %s842_s28  ;;  %s187_s8 = scalar_lea.vmem [#allocation2], %s788_s27 }
  0x34   : > { %s194_s9 = sshll.u32 %s187_s8, 4  ;;  %p1316_p2 = pnand %p944_p5, %p37_p3  ;;  %s1314_s9 = int_to_ptr.vmem [resolvable:$true] %s194_s9 }
  0x35   : > { %s1320_s11 = scalar_lea.sflag [#allocation3], %s183_s26  ;;  %s1081_s12 = scalar_lea.hbm %s1312_s7, 1024 }
  0x36   : > { %p1082_p10 = scmp.ne.s32.totalorder %s1312_s7, %s1081_s12  ;;  %p1083_p7 = pneg %p1316_p2 }
  0x37   : > { %s1086_s27 = scalar_lea.hbm %s1432_s0, 8192  ;;  %p1087_p12 = scmp.lt.s32.totalorder %s1312_s7, %s1432_s0 }
  0x38   : > { %p1084_p9 = pnand %p1083_p7, %p1082_p10  ;;  %p1088_p13 = scmp.lt.s32.totalorder %s1086_s27, %s1081_s12 }
  0x3a   : > { %p1085_p11 = pneg %p1084_p9  ;;  %p1089_p3 = por %p1088_p13, %p1087_p12 }
  0x3c   : > { %p1090_p5 = pnand %p1089_p3, %p1085_p11 }
  0x3e   : > { %1093 = shalt.err (!%p1090_p5)
}
  0x3f   : > { %s1094_s26 = scalar_lea.vmem %s1314_s9, 1024  ;;  %s1185_s6 = smov [#allocation2]  }
  0x40   : > { %p1095_p1 = scmp.ne.s32.totalorder %s1314_s9, %s1094_s26  ;;  %s1099_s8 = sshll.u32 %s1185_s6, 4  ;;  %s1100_s8 = int_to_ptr.vmem [resolvable:$false] %s1099_s8 }
  0x41   : > { %s1101_s14 = scalar_lea.vmem %s1100_s8, 2048  ;;  %p1102_p9 = scmp.lt.s32.totalorder %s1314_s9, %s1100_s8 }
  0x42   : > { %p1097_p6 = pnand %p1095_p1, %p1083_p7  ;;  %p1103_p0 = scmp.lt.s32.totalorder %s1101_s14, %s1094_s26 }
  0x44   : > { %p1098_p10 = pneg %p1097_p6  ;;  %p1104_p4 = por %p1103_p0, %p1102_p9 }
  0x46   : > { %p1105_p8 = pnand %p1104_p4, %p1098_p10 }
  0x48   : > { %1108 = shalt.err (!%p1105_p8)
}
  0x49   : > { %937 = dma.hbm_to_vmem [thread:$0]  (!%p1316_p2), %s1312_s7, 1024, %s1314_s9, %s1320_s11, %s1181_s30, %s1181_s30, %s1182_s5  }
  0x4a   : > { %p1447_p1 = scmp.ne.s32.totalorder %s1443_s23, 0 }
  0x4b   : > { %s1347_s12 = sand.u32 (!%p1447_p1), 1, %s1169_s16   ;;  %p1448_p4 = scmp.ne.s32.totalorder (!%p1447_p1), %s1441_s21, 0 }
  0x4c   : > { %206 = sbr.rel (%p1447_p1) target bundleno = 563 (0x233), region = 36  ;;  %s792_s20 = sshll.u32 (!%p1447_p1), %s1347_s12, 6 }
  0x4d   : > { %s209_s27 = scalar_lea.sflag (!%p1447_p1), [#allocation3], %s1347_s12  ;;  %s1351_s28 = scalar_lea.vmem (!%p1447_p1), [#allocation2], %s792_s20 }
  0x51   : > { %1152 = dma.done.wait (%p1448_p4), %s209_s27, 1024  }
  0x52   : > { %1154 = vsyncadd (%p1448_p4), %s209_s27, 4294966272  ;;  %p1449_p6 = scmp.eq.s32.totalorder %s1236_s19, 0 }
  0x54   : > { %1156 = dma.done.wait (%p1449_p6), [#allocation6], 4096   ;;  %p1450_p8 = pmov %p1449_p6 }
  0x55   : > { %v1186_v0 = vmov 0   ;;  %v989_v1 = vld [vmem:[#allocation5 + $0x74] ss:$8 sps:$4 sm:$0xff]   ;;  %v991_v2 = vld [vmem:[#allocation5 + $0x70] ss:$8 sps:$4 sm:$0xff]   ;;  %v1017_v16 = vld [vmem:[#allocation7 + $0x68] sm:$0xff]  }
  0x56   : > { %1158 = vsyncadd (%p1450_p8), [#allocation6], 4294963200  ;;  %388 = vmatprep.mubr.bf16.mxu0 %v1186_v0  ;;  %356 = vmatprep.subr.bf16.mxu0 %v989_v1  ;;  %v992_v3 = vld [vmem:[#allocation5 + $0x64] ss:$8 sps:$4 sm:$0xff]   ;;  %v994_v4 = vld [vmem:[#allocation5 + $0x60] ss:$8 sps:$4 sm:$0xff]  }
  0x57   : > { %357 = vmatpush1.bf16.msra.mxu0 %v991_v2  ;;  %v995_v5 = vld [vmem:[#allocation5 + $0x54] ss:$8 sps:$4 sm:$0xff]   ;;  %v997_v6 = vld [vmem:[#allocation5 + $0x50] ss:$8 sps:$4 sm:$0xff]   ;;  %v998_v7 = vld [vmem:[#allocation5 + $0x44] ss:$8 sps:$4 sm:$0xff]  }
  0x58   : > { %358 = vmatprep.subr.bf16.mxu0 %v992_v3  ;;  %v1000_v8 = vld [vmem:[#allocation5 + $0x40] ss:$8 sps:$4 sm:$0xff]   ;;  %v1001_v9 = vld [vmem:[#allocation5 + $0x34] ss:$8 sps:$4 sm:$0xff]   ;;  %v1003_v10 = vld [vmem:[#allocation5 + $0x30] ss:$8 sps:$4 sm:$0xff]  }
  0x59   : > { %v1004_v11 = vld [vmem:[#allocation5 + $0x24] ss:$8 sps:$4 sm:$0xff]   ;;  %v1013_v12 = vld [vmem:[#allocation7 + $0x78] sm:$0xff]   ;;  %v1015_v14 = vld [vmem:[#allocation7 + $0x70] sm:$0xff]   ;;  %s795_s30 = sshll.u32 %s1347_s12, 5  ;;  %s851_s9 = sshll.u32 %s1236_s19, 9 }
  0x5a   : > { %v1014_v13 = vld [vmem:[#allocation7 + $0x38] sm:$0xff]   ;;  %875 = vmatprep.subr.bf16.mxu1 %v1013_v12  ;;  %v1016_v15 = vld [vmem:[#allocation7 + $0x30] sm:$0xff]   ;;  %v1006_v17 = vld [vmem:[#allocation5 + $0x20] ss:$8 sps:$4 sm:$0xff]   ;;  %s1377_s5 = scalar_lea.vmem [#allocation8], %s795_s30  ;;  %s1389_s29 = scalar_lea.hbm %s1436_s4, %s851_s9 }
  0x5b   : > { %359 = vmatpush1.bf16.msra.mxu0 %v994_v4  ;;  %876 = vmatpush3.bf16.msra.mxu1 %v1014_v13  ;;  %v1007_v18 = vld [vmem:[#allocation5 + $0x14] ss:$8 sps:$4 sm:$0xff]   ;;  %v1009_v19 = vld [vmem:[#allocation5 + $0x10] ss:$8 sps:$4 sm:$0xff]   ;;  %v1018_v20 = vld [vmem:[#allocation7 + $0x28] sm:$0xff]   ;;  %s691_s7 = sshll.u32 %s1377_s5, 4  ;;  %s1384_s7 = int_to_ptr.vmem [resolvable:$true] %s691_s7 }
  0x5c   : > { %360 = vmatprep.subr.bf16.mxu0 %v995_v5  ;;  %877 = vmatprep.subr.bf16.mxu1 %v1015_v14  ;;  %v1019_v21 = vld [vmem:[#allocation7 + $0x60] sm:$0xff]   ;;  %v249_v26 = vld [vmem:[%s1351_s28 + $0x8] sm:$0xff]  ;;  %v1021_v27 = vld [vmem:[#allocation7 + $0x58] sm:$0xff]   ;;  %s678_s26 = scalar_lea.sflag [#allocation4], %s1347_s12  ;;  %s1109_s6 = scalar_lea.vmem %s1384_s7, 512 }
  0x5d   : > { %v1010_v22 = vld [vmem:[#allocation5 + $0x4] ss:$8 sps:$4 sm:$0xff]   ;;  %v1012_v24 = vld [vmem:[#allocation5] ss:$8 sps:$4 sm:$0xff]   ;;  %v1022_v28 = vld [vmem:[#allocation7 + $0x18] sm:$0xff]   ;;  %p1110_p0 = scmp.ne.s32.totalorder %s1384_s7, %s1109_s6  ;;  %p1451_p2 = scmp.ne.s32.totalorder %s1445_s25, 0 }
  0x5e   : > { %v1020_v23 = vld [vmem:[#allocation7 + $0x20] sm:$0xff]   ;;  %v1023_v30 = vld [vmem:[#allocation7 + $0x50] sm:$0xff]   ;;  %v251_v33 = vld [vmem:[%s1351_s28 + $0x18] sm:$0xff]  ;;  %s1187_s19 = smov [#allocation8]  }
  0x5f   : > { %361 = vmatpush1.bf16.msra.mxu0 %v997_v6  ;;  %878 = vmatpush3.bf16.msra.mxu1 %v1016_v15  ;;  %v248_v25 = vld [vmem:[%s1351_s28] sm:$0xff]  ;;  %v1024_v31 = vld [vmem:[#allocation7 + $0x10] sm:$0xff]   ;;  %v253_v36 = vld [vmem:[%s1351_s28 + $0x28] sm:$0xff]  ;;  %p1111_p7 = pnand %p1110_p0, %p1451_p2  ;;  %s1113_s8 = sshll.u32 %s1187_s19, 4  ;;  %s1114_s8 = int_to_ptr.vmem [resolvable:$false] %s1113_s8 }
  0x60   : > { %362 = vmatprep.subr.bf16.mxu0 %v998_v7  ;;  %879 = vmatprep.subr.bf16.mxu1 %v1017_v16  ;;  %v256_v29 = vpack.c.bf16 %v249_v26, %v248_v25  ;;  %v250_v32 = vld [vmem:[%s1351_s28 + $0x10] sm:$0xff]  ;;  %v252_v35 = vld [vmem:[%s1351_s28 + $0x20] sm:$0xff]  ;;  %v255_v39 = vld [vmem:[%s1351_s28 + $0x38] sm:$0xff]  ;;  %s1115_s14 = scalar_lea.vmem %s1114_s8, 1024  ;;  %p1116_p12 = scmp.lt.s32.totalorder %s1384_s7, %s1114_s8 }
  0x61   : > { %v257_v34 = vpack.c.bf16 %v251_v33, %v250_v32  ;;  %v258_v37 = vpack.c.bf16 %v253_v36, %v252_v35  ;;  %v254_v38 = vld [vmem:[%s1351_s28 + $0x30] sm:$0xff]  ;;  %v1025_v41 = vld [vmem:[#allocation7 + $0x48] sm:$0xff]   ;;  %v1027_v43 = vld [vmem:[#allocation7 + $0x40] sm:$0xff]   ;;  %p1112_p11 = pneg %p1111_p7  ;;  %p1117_p13 = scmp.lt.s32.totalorder %s1115_s14, %s1109_s6 }
  0x62   : > { %v259_v40 = vpack.c.bf16 %v255_v39, %v254_v38  ;;  %v1026_v42 = vld [vmem:[#allocation7 + $0x8] sm:$0xff]   ;;  %v1028_v44 = vld [vmem:[#allocation7] sm:$0xff]  }
  0x63   : > { %363 = vmatpush1.bf16.msra.mxu0 %v1000_v8  ;;  %880 = vmatpush3.bf16.msra.mxu1 %v1018_v20  ;;  %p1118_p3 = por %p1117_p13, %p1116_p12 }
  0x64   : > { %364 = vmatprep.subr.bf16.mxu0 %v1001_v9  ;;  %881 = vmatprep.subr.bf16.mxu1 %v1019_v21  ;;  %v812_v9 = vld [vmem:[%s1435_s3] ss:$0 sm:$0xff] }
  0x65   : > { %p1119_p5 = pnand %p1118_p3, %p1112_p11 }
  0x67   : > { %365 = vmatpush1.bf16.msra.mxu0 %v1003_v10  ;;  %882 = vmatpush3.bf16.msra.mxu1 %v1020_v23 }
  0x68   : > { %366 = vmatprep.subr.bf16.mxu0 %v1004_v11  ;;  %883 = vmatprep.subr.bf16.mxu1 %v1021_v27 }
  0x6b   : > { %367 = vmatpush1.bf16.msra.mxu0 %v1006_v17  ;;  %884 = vmatpush3.bf16.msra.mxu1 %v1022_v28 }
  0x6c   : > { %368 = vmatprep.subr.bf16.mxu0 %v1007_v18  ;;  %885 = vmatprep.subr.bf16.mxu1 %v1023_v30 }
  0x6f   : > { %369 = vmatpush1.bf16.msra.mxu0 %v1009_v19  ;;  %886 = vmatpush3.bf16.msra.mxu1 %v1024_v31 }
  0x70   : > { %370 = vmatprep.subr.bf16.mxu0 %v1010_v22  ;;  %887 = vmatprep.subr.bf16.mxu1 %v1025_v41 }
  0x73   : > { %371 = vmatpush1.bf16.msra.mxu0 %v1012_v24  ;;  %888 = vmatpush3.bf16.msra.mxu1 %v1026_v42 }
  0x74   : > { %889 = vmatprep.subr.bf16.mxu1 %v1027_v43 }
  0x76   : > { %389 = vmatmul.mubr.bf16.vlgmr.msra.gmra.mxu0 %v256_v29 }
  0x77   : > { %398 = vmatprep.mubr.bf16.mxu0 %v1186_v0  ;;  %890 = vmatpush3.bf16.msra.mxu1 %v1028_v44 }
  0x7e   : > { %399 = vmatmul.mubr.bf16.gmra.mxu0 %v257_v34 }
  0x7f   : > { %408 = vmatprep.mubr.bf16.mxu0 %v1186_v0 }
  0x86   : > { %409 = vmatmul.mubr.bf16.gmra.mxu0 %v258_v37 }
  0x87   : > { %418 = vmatprep.mubr.bf16.mxu0 %v1186_v0 }
  0x8e   : > { %419 = vmatmul.mubr.bf16.gmra.mxu0 %v259_v40 }
 0x136   : > { %v390_v45 = vpop.f32.mrf.mxu0 }
 0x138   : > { %v392_v46 = vpop.f32.mrf.mxu0 }
 0x13a   : > { %v394_v47 = vpop.f32.mrf.mxu0 }
 0x13b   : > { %v429_v50 = vpack.c.bf16 %v394_v47, %v390_v45 }
 0x13c   : > { %v396_v48 = vpop.f32.mrf.mxu0 }
 0x13d   : > { %v430_v49 = vpack.c.bf16 %v396_v48, %v392_v46 }
 0x13e   : > { %v400_v51 = vpop.f32.mrf.mxu0 }
 0x13f   : > { %604 = vmatprep.mubr.bf16.mxu1 %v430_v49 }
 0x140   : > { %v402_v52 = vpop.f32.mrf.mxu0  ;;  %605 = vmatmul.mubr.bf16.vlgmr.msra.gmra.mxu1 %v429_v50 }
 0x142   : > { %v404_v53 = vpop.f32.mrf.mxu0 }
 0x143   : > { %v431_v56 = vpack.c.bf16 %v404_v53, %v400_v51 }
 0x144   : > { %v406_v54 = vpop.f32.mrf.mxu0 }
 0x145   : > { %v432_v55 = vpack.c.bf16 %v406_v54, %v402_v52 }
 0x146   : > { %v410_v57 = vpop.f32.mrf.mxu0 }
 0x147   : > { %612 = vmatprep.mubr.bf16.mxu1 %v432_v55 }
 0x148   : > { %v412_v58 = vpop.f32.mrf.mxu0  ;;  %613 = vmatmul.mubr.bf16.gmra.mxu1 %v431_v56 }
 0x14a   : > { %v414_v59 = vpop.f32.mrf.mxu0 }
 0x14b   : > { %v433_v62 = vpack.c.bf16 %v414_v59, %v410_v57 }
 0x14c   : > { %v416_v60 = vpop.f32.mrf.mxu0 }
 0x14d   : > { %v434_v61 = vpack.c.bf16 %v416_v60, %v412_v58 }
 0x14e   : > { %v420_v63 = vpop.f32.mrf.mxu0 }
 0x14f   : > { %620 = vmatprep.mubr.bf16.mxu1 %v434_v61 }
 0x150   : > { %v422_v0 = vpop.f32.mrf.mxu0  ;;  %621 = vmatmul.mubr.bf16.gmra.mxu1 %v433_v62 }
 0x152   : > { %v424_v1 = vpop.f32.mrf.mxu0 }
 0x153   : > { %v435_v4 = vpack.c.bf16 %v424_v1, %v420_v63 }
 0x154   : > { %v426_v2 = vpop.f32.mrf.mxu0 }
 0x155   : > { %v436_v3 = vpack.c.bf16 %v426_v2, %v422_v0 }
 0x157   : > { %628 = vmatprep.mubr.bf16.mxu1 %v436_v3 }
 0x158   : > { %629 = vmatmul.mubr.bf16.gmra.mxu1 %v435_v4 }
 0x200   : > { %v891_v5 = vpop.f32.mrf.mxu1 }
 0x202   : > { %v892_v6 = vpop.f32.mrf.mxu1 }
 0x203   : > { %v893_v8 = vadd.f32 %v892_v6, %v891_v5 }
 0x204   : > { %v894_v7 = vpop.f32.mrf.mxu1 }
 0x205   : > { %v607_v13 = vadd.f32 %v893_v8, %v812_v9 }
 0x206   : > { %v895_v10 = vpop.f32.mrf.mxu1 }
 0x207   : > { %v896_v11 = vadd.f32 %v895_v10, %v894_v7 }
 0x208   : > { %v897_v12 = vpop.f32.mrf.mxu1 }
 0x209   : > { %v610_v14 = vadd.f32 %v896_v11, %v812_v9 }
 0x20a   : > { %v898_v15 = vpop.f32.mrf.mxu1 }
 0x20b   : > { %v855_v16 = vpack.c.bf16 %v610_v14, %v607_v13  ;;  %v899_v18 = vadd.f32 %v898_v15, %v897_v12 }
 0x20c   : > { %v900_v17 = vpop.f32.mrf.mxu1 }
 0x20d   : > { %856 = vst [vmem:[%s1377_s5] sm:$0xff] %v855_v16   ;;  %v615_v22 = vadd.f32 %v899_v18, %v812_v9 }
 0x20e   : > { %v901_v19 = vpop.f32.mrf.mxu1 }
 0x20f   : > { %v902_v20 = vadd.f32 %v901_v19, %v900_v17 }
 0x210   : > { %v903_v21 = vpop.f32.mrf.mxu1 }
 0x211   : > { %v618_v23 = vadd.f32 %v902_v20, %v812_v9 }
 0x212   : > { %v904_v24 = vpop.f32.mrf.mxu1 }
 0x213   : > { %v860_v25 = vpack.c.bf16 %v618_v23, %v615_v22  ;;  %v905_v27 = vadd.f32 %v904_v24, %v903_v21 }
 0x214   : > { %v906_v26 = vpop.f32.mrf.mxu1 }
 0x215   : > { %872 = vst [vmem:[%s1377_s5 + $0x8] sm:$0xff] %v860_v25   ;;  %v623_v31 = vadd.f32 %v905_v27, %v812_v9 }
 0x216   : > { %v907_v28 = vpop.f32.mrf.mxu1 }
 0x217   : > { %v908_v29 = vadd.f32 %v907_v28, %v906_v26 }
 0x218   : > { %v909_v30 = vpop.f32.mrf.mxu1 }
 0x219   : > { %v626_v32 = vadd.f32 %v908_v29, %v812_v9 }
 0x21a   : > { %v910_v33 = vpop.f32.mrf.mxu1 }
 0x21b   : > { %v865_v34 = vpack.c.bf16 %v626_v32, %v623_v31  ;;  %v911_v36 = vadd.f32 %v910_v33, %v909_v30 }
 0x21c   : > { %v912_v35 = vpop.f32.mrf.mxu1 }
 0x21d   : > { %873 = vst [vmem:[%s1377_s5 + $0x10] sm:$0xff] %v865_v34   ;;  %v631_v39 = vadd.f32 %v911_v36, %v812_v9 }
 0x21e   : > { %v913_v37 = vpop.f32.mrf.mxu1 }
 0x21f   : > { %v914_v38 = vadd.f32 %v913_v37, %v912_v35 }
 0x221   : > { %v634_v40 = vadd.f32 %v914_v38, %v812_v9 }
 0x223   : > { %v870_v41 = vpack.c.bf16 %v634_v40, %v631_v39 }
 0x225   : > { %874 = vst [vmem:[%s1377_s5 + $0x18] sm:$0xff] %v870_v41  }
 0x226   : > { %1122 = shalt.err (!%p1119_p5)
}
 0x227   : > { %s1123_s20 = scalar_lea.hbm %s1389_s29, 512  ;;  %s1127_s21 = scalar_lea.hbm %s1436_s4, 4096 }
 0x228   : > { %p1124_p10 = scmp.ne.s32.totalorder %s1389_s29, %s1123_s20  ;;  %p1128_p4 = scmp.lt.s32.totalorder %s1389_s29, %s1436_s4 }
 0x229   : > { %p1129_p6 = scmp.lt.s32.totalorder %s1127_s21, %s1123_s20 }
 0x22a   : > { %p1125_p9 = pnand %p1124_p10, %p1451_p2 }
 0x22b   : > { %p1130_p8 = por %p1129_p6, %p1128_p4 }
 0x22c   : > { %p1126_p1 = pneg %p1125_p9 }
 0x22e   : > { %p1131_p0 = pnand %p1130_p8, %p1126_p1 }
 0x230   : > { %1134 = shalt.err (!%p1131_p0)
}
 0x231   : > { %s1188_s5 = smov 64   ;;  %s1189_s9 = smov 4  }
 0x232   : > { %925 = dma.vmem_to_hbm [thread:$0]  (%p1451_p2), %s1384_s7, 512, %s1389_s29, %s678_s26, %s1188_s5, %s1188_s5, %s1189_s9  }
 0x233 PF: > { %p947_p7 = scmp.ge.s32.totalorder %s1177_s18, 2  ;;  %s706_s10 = sand.u32 1, %s1165_s15  }
 0x234   : > { %p1452_p11 = scmp.ne.s32.totalorder %s1442_s22, 0  ;;  %s707_s11 = scalar_lea.sflag [#allocation4], %s706_s10 }
 0x236   : > { %p939_p12 = pnand %p947_p7, %p1452_p11 }
 0x238   : > { %p940_p13 = pneg %p939_p12 }
 0x23a   : > { %1160 = dma.done.wait (%p940_p13), %s707_s11, 512  }
 0x23b   : > { %1162 = vsyncadd (%p940_p13), %s707_s11, 4294966784  ;;  %p18_p3 = scmp.ge.s32.totalorder %s1289_s13, 10   ;;  %s1453_s15 = smov %s1169_s16 }
 0x23c   : > { %s1454_s16 = smov %s1173_s17  ;;  %s1455_s17 = smov %s1298_s24 }
 0x23d   : > { %s1456_s18 = smov %s1289_s13  ;;  %20 = sbr.rel (!%p18_p3) target bundleno = 6 (0x6), region = 89 }
 0x242   :  { %712 = vsyncpa [#allocation3], 1 }
 0x243   :  { %714 = vsyncpa [#allocation3 + $0x1], 1 }
 0x244   :  { %715 = vsyncpa [#allocation6], 1 }
 0x245   :  { %716 = vsyncpa [#allocation4], 1 }
 0x246   :  { %718 = vsyncpa [#allocation4 + $0x1], 1 }

</bundles_post_ra>
